<compile_context>
chip_gen: v6e
topology: v6e:2x2x1
jax: 0.10.0
libtpu: 0.0.40
codegen_flags: <defaults>
</compile_context>

<pallas_src>
import math
import functools

import jax
import jax.numpy as jnp
from jax import lax
from jax.experimental import pallas as pl
from jax.experimental.pallas import tpu as pltpu


# ---------------------------------------------------------------------------
# Weight construction (mirrors GaussianSmoothing.__init__)
# ---------------------------------------------------------------------------
def make_gaussian_taps_1d(kernel_size, sigma, dim=2):
    """Per-axis normalized 1-D Gaussian taps as tuples of Python floats.

    The module's 2-D filter is the normalized outer product of these 1-D
    Gaussians (each sums to 1), so a separable two-pass convolution is
    mathematically identical to the depthwise 2-D convolution in the module.
    Returned as Python floats so they can be closure-baked into the kernel.
    """
    if isinstance(kernel_size, (int, float)):
        kernel_size = [int(kernel_size)] * dim
    if isinstance(sigma, (int, float)):
        sigma = [float(sigma)] * dim
    taps = []
    for size, std in zip(kernel_size, sigma):
        mean = (size - 1) / 2.0
        k = [
            math.exp(-(((c - mean) / std) ** 2) / 2.0) / (std * math.sqrt(2.0 * math.pi))
            for c in range(int(size))
        ]
        s = sum(k)
        taps.append(tuple(v / s for v in k))
    return taps


def make_gaussian_weight(channels, kernel_size, sigma, dim=2):
    """Exact mirror of the module's (C, K, K) 2-D weight (used by the reference)."""
    if isinstance(kernel_size, (int, float)):
        kernel_size = [int(kernel_size)] * dim
    if isinstance(sigma, (int, float)):
        sigma = [float(sigma)] * dim
    meshgrids = jnp.meshgrid(
        *[jnp.arange(s, dtype=jnp.float32) for s in kernel_size], indexing="ij"
    )
    kernel = jnp.ones((), dtype=jnp.float32)
    for size, std, mgrid in zip(kernel_size, sigma, meshgrids):
        mean = (size - 1) / 2.0
        kernel = kernel * (
            1.0 / (std * math.sqrt(2.0 * math.pi))
            * jnp.exp(-(((mgrid - mean) / std) ** 2) / 2.0)
        )
    kernel = kernel / jnp.sum(kernel)
    return jnp.broadcast_to(kernel, (channels,) + kernel.shape)


# ---------------------------------------------------------------------------
# Pallas kernel
# ---------------------------------------------------------------------------
def _smoothing_kernel(x_ref, o_ref, *, wv, wh, Ho, Wo):
    """Separable two-pass Gaussian on a (TB, H, W) block.

    wv, wh : Python float taps (vertical / horizontal), closure constants.
    x_ref  : VMEM (TB, H, W)  -- TB fused (batch, channel) images, native dtype
    o_ref  : VMEM (TB, Ho, Wo)
    """
    # Horizontal (lane-axis) pass directly on the 3-D block. Each tap slice is
    # cast to f32 individually -- no whole-block f32 copy, no reshapes.
    acc = wh[0] * x_ref[:, :, 0:Wo].astype(jnp.float32)
    for j in range(1, len(wh)):
        acc = acc + wh[j] * x_ref[:, :, j:j + Wo].astype(jnp.float32)

    # Vertical (sublane-axis) pass.
    out = wv[0] * acc[:, 0:Ho, :]
    for i in range(1, len(wv)):
        out = out + wv[i] * acc[:, i:i + Ho, :]

    o_ref[...] = out.astype(o_ref.dtype)


# ---------------------------------------------------------------------------
# Wrapper: tiling / VMEM budgeting
# ---------------------------------------------------------------------------
def _physical_vmem_bytes():
    """Per-TensorCore VMEM capacity; conservative (v7x) fallback if unknown."""
    try:
        info = pltpu.get_tpu_info()
        v = getattr(info, "vmem_capacity_bytes", None)
        if v:
            return int(v)
    except Exception:
        pass
    return 64 * 1024 * 1024  # v7x has the smallest VMEM; safe everywhere.


def gaussian_smoothing(x, taps_1d, *, vmem_limit_bytes=None):
    """Depthwise valid conv2d (stride 1, no padding), identical filter/channel.

    x: (N, C, H, W); taps_1d: [wv (len Kh), wh (len Kw)] normalized 1-D taps.
    Returns (N, C, H-Kh+1, W-Kw+1) in x.dtype.
    """
    N, C, H, W = x.shape
    wv, wh = taps_1d
    Kh, Kw = len(wv), len(wh)
    assert 1 <= Kh <= H and 1 <= Kw <= W, (
        "Gaussian kernel larger than the image: valid convolution requires "
        f"K <= spatial size (got Kh={Kh}, Kw={Kw}, H={H}, W={W})")
    Ho, Wo = H - Kh + 1, W - Kw + 1
    NC = N * C

    x_nc = x.reshape(NC, H, W)
    itemsize = x.dtype.itemsize

    # --- Generation-aware VMEM budget (limit and block budget derived together).
    phys = _physical_vmem_bytes()
    if vmem_limit_bytes is None:
        base_limit = min(int(phys * 0.70), 96 * 1024 * 1024)
    else:
        base_limit = int(vmem_limit_bytes)
    block_budget = base_limit // 2  # headroom for compiler scratch / misc.

    # Per-image per-step VMEM estimate: double-buffered in/out blocks plus the
    # f32 intermediates (horizontal accumulator + output accumulator).
    per_image = (2 * H * W + 2 * Ho * Wo) * itemsize + (H * Wo + Ho * Wo) * 4

    tb_budget = max(1, block_budget // per_image)
    tb_floor = max(1, (2 * 1024 * 1024) // per_image)   # keep blocks >= ~2 MiB
    tb_depth = pl.cdiv(NC, 8)                            # aim for ~8 grid steps
    tb = max(1, min(NC, min(tb_budget, max(tb_depth, tb_floor))))

    # Tie the scoped VMEM limit to the actual block choice (never below the
    # estimate + headroom, never above ~90% of physical VMEM).
    est = per_image * tb
    vmem_limit = max(base_limit, min(int(phys * 0.9), est + 8 * 1024 * 1024))

    grid = (pl.cdiv(NC, tb),)  # ragged last block is padded/masked by Pallas

    kernel = functools.partial(
        _smoothing_kernel, wv=tuple(wv), wh=tuple(wh), Ho=Ho, Wo=Wo)

    out_nc = pl.pallas_call(
        kernel,
        out_shape=jax.ShapeDtypeStruct((NC, Ho, Wo), x.dtype),
        grid_spec=pltpu.PrefetchScalarGridSpec(
            num_scalar_prefetch=0,
            grid=grid,
            in_specs=[pl.BlockSpec((tb, H, W), lambda i: (i, 0, 0))],
            out_specs=pl.BlockSpec((tb, Ho, Wo), lambda i: (i, 0, 0)),
        ),
        compiler_params=pltpu.CompilerParams(
            dimension_semantics=("parallel",),
            vmem_limit_bytes=int(vmem_limit),
        ),
    )(x_nc)

    return out_nc.reshape(N, C, Ho, Wo)


# ---------------------------------------------------------------------------
# Reference (XLA depthwise conv, same as torch F.conv2d with groups=C)
# ---------------------------------------------------------------------------
def _reference(x, weight):
    C = x.shape[1]
    K = weight.shape[-1]
    w = weight.reshape(C, 1, K, K).astype(jnp.float32)
    return lax.conv_general_dilated(
        x.astype(jnp.float32), w,
        window_strides=(1, 1), padding="VALID",
        dimension_numbers=("NCHW", "OIHW", "NCHW"),
        feature_group_count=C,
    ).astype(x.dtype)


if __name__ == "__main__":
    # Module config (synthetic, deterministic): channels=4, kernel_size=3, sigma=2, dim=2
    channels, kernel_size, sigma = 4, 3, 2.0
    N, H, W = 2, 16, 16

    key = jax.random.PRNGKey(0)
    x = jax.random.normal(key, (N, channels, H, W), dtype=jnp.float32)

    taps = make_gaussian_taps_1d(kernel_size, sigma, dim=2)
    out = gaussian_smoothing(x, taps)
    out = jax.block_until_ready(out)

    weight2d = make_gaussian_weight(channels, kernel_size, sigma, dim=2)
    ref = jax.block_until_ready(_reference(x, weight2d))

    assert out.shape == (N, channels, H - kernel_size + 1, W - kernel_size + 1)
    assert jnp.allclose(out, ref, rtol=1e-5, atol=1e-5)

    print("KERNEL_OK")
</pallas_src>

<mosaic_0001>
module attributes {stable_mosaic.version = 11 : i64} {
  func.func @_smoothing_kernel(%arg0: i32, %arg1: memref<8x16x16xf32, #tpu.memory_space<vmem>>, %arg2: memref<8x14x14xf32, #tpu.memory_space<vmem>>) attributes {dimension_semantics = [#tpu.dimension_semantics<parallel>], iteration_bounds = array<i64: 1>, scalar_prefetch = 0 : i64, scratch_operands = 0 : i64, tpu.core_type = #tpu.core_type<tc>, window_params = [{transform_indices = @transform_0, window_bounds = array<i64: 8, 16, 16>}, {transform_indices = @transform_1, window_bounds = array<i64: 8, 14, 14>}]} {
    %c0 = arith.constant 0 : index
    %c0_0 = arith.constant 0 : index
    %c0_1 = arith.constant 0 : index
    %0 = vector.load %arg1[%c0, %c0_0, %c0_1] : memref<8x16x16xf32, #tpu.memory_space<vmem>>, vector<8x16x14xf32>
    %cst = arith.constant 0.319167763 : f32
    %1 = vector.broadcast %cst : f32 to vector<8x16x14xf32>
    %2 = arith.mulf %1, %0 : vector<8x16x14xf32>
    %c0_2 = arith.constant 0 : index
    %c0_3 = arith.constant 0 : index
    %c1 = arith.constant 1 : index
    %3 = vector.load %arg1[%c0_2, %c0_3, %c1] : memref<8x16x16xf32, #tpu.memory_space<vmem>>, vector<8x16x14xf32>
    %cst_4 = arith.constant 0.361664474 : f32
    %4 = vector.broadcast %cst_4 : f32 to vector<8x16x14xf32>
    %5 = arith.mulf %4, %3 : vector<8x16x14xf32>
    %6 = arith.addf %2, %5 : vector<8x16x14xf32>
    %c0_5 = arith.constant 0 : index
    %c0_6 = arith.constant 0 : index
    %c2 = arith.constant 2 : index
    %7 = vector.load %arg1[%c0_5, %c0_6, %c2] : memref<8x16x16xf32, #tpu.memory_space<vmem>>, vector<8x16x14xf32>
    %cst_7 = arith.constant 0.319167763 : f32
    %8 = vector.broadcast %cst_7 : f32 to vector<8x16x14xf32>
    %9 = arith.mulf %8, %7 : vector<8x16x14xf32>
    %10 = arith.addf %6, %9 : vector<8x16x14xf32>
    %11 = vector.extract_strided_slice %10 {offsets = [0, 0, 0], sizes = [8, 14, 14], strides = [1, 1, 1]} : vector<8x16x14xf32> to vector<8x14x14xf32>
    %cst_8 = arith.constant 0.319167763 : f32
    %12 = vector.broadcast %cst_8 : f32 to vector<8x14x14xf32>
    %13 = arith.mulf %12, %11 : vector<8x14x14xf32>
    %14 = vector.extract_strided_slice %10 {offsets = [0, 1, 0], sizes = [8, 14, 14], strides = [1, 1, 1]} : vector<8x16x14xf32> to vector<8x14x14xf32>
    %cst_9 = arith.constant 0.361664474 : f32
    %15 = vector.broadcast %cst_9 : f32 to vector<8x14x14xf32>
    %16 = arith.mulf %15, %14 : vector<8x14x14xf32>
    %17 = arith.addf %13, %16 : vector<8x14x14xf32>
    %18 = vector.extract_strided_slice %10 {offsets = [0, 2, 0], sizes = [8, 14, 14], strides = [1, 1, 1]} : vector<8x16x14xf32> to vector<8x14x14xf32>
    %cst_10 = arith.constant 0.319167763 : f32
    %19 = vector.broadcast %cst_10 : f32 to vector<8x14x14xf32>
    %20 = arith.mulf %19, %18 : vector<8x14x14xf32>
    %21 = arith.addf %17, %20 : vector<8x14x14xf32>
    %c0_11 = arith.constant 0 : index
    %c0_12 = arith.constant 0 : index
    %c0_13 = arith.constant 0 : index
    %22 = vector.load %arg2[%c0_11, %c0_12, %c0_13] : memref<8x14x14xf32, #tpu.memory_space<vmem>>, vector<8x14x14xf32>
    tpu.vector_store %arg2[%c0_11, %c0_12, %c0_13], %21 {strides = array<i32>} : memref<8x14x14xf32, #tpu.memory_space<vmem>>, vector<8x14x14xf32>,
    return
  }
  func.func @transform_0(%arg0: i32) -> (i32, i32, i32) {
    %c0_i32 = arith.constant 0 : i32
    %c0_i32_0 = arith.constant 0 : i32
    %c0_i32_1 = arith.constant 0 : i32
    return %arg0, %c0_i32, %c0_i32_0 : i32, i32, i32
  }
  func.func @transform_1(%arg0: i32) -> (i32, i32, i32) {
    %c0_i32 = arith.constant 0 : i32
    %c0_i32_0 = arith.constant 0 : i32
    %c0_i32_1 = arith.constant 0 : i32
    return %arg0, %c0_i32, %c0_i32_0 : i32, i32, i32
  }
}

</mosaic_0001>

<bundles_post_ra>
// kernel: tpu_custom_call.1
= control target key start
LH: loop header
LB: loop body
LE: loop exit
PB: predicated region body
PF: predicated region fallthrough
CT: control target
= control target key end

     0   :  { %6 = vsyncpa [#allocation3], 0  ;;  %s458_s6 = smov [#allocation2]   ;;  %s615_s0 = inlined_call_operand.hbm [shape: f32[8,16,16], index: 0, kind: input, shape index: {}]   ;;  %s616_s1 = inlined_call_operand.vmem [shape: f32[8,14,14], index: 1, kind: output, shape index: {}]  }
   0x1   :  { %s12_s7 = sshll.u32 %s458_s6, 4  ;;  %s13_s7 = int_to_ptr.vmem [resolvable:$true] %s12_s7 }
   0x2   :  { %s444_s8 = scalar_lea.vmem %s13_s7, 2048  ;;  %p449_p1 = scmp.lt.s32.totalorder %s13_s7, %s13_s7 }
   0x3   :  { %p445_p0 = scmp.ne.s32.totalorder %s13_s7, %s444_s8  ;;  %p450_p2 = scmp.lt.s32.totalorder %s444_s8, %s444_s8 }
   0x5   :  { %p451_p3 = por %p450_p2, %p449_p1 }
   0x7   :  { %p452_p4 = pnand %p451_p3, %p445_p0 }
   0x9   :  { %455 = shalt.err (!%p452_p4)
}
   0xa   :  { %s459_s9 = smov 128   ;;  %s460_s10 = smov 8  }
   0xb   :  { %18 = dma.hbm_to_vmem [thread:$0]  %s615_s0, 2048, %s13_s7, [#allocation3], %s459_s9, %s459_s9, %s460_s10  }
   0xc   :  { %456 = dma.done.wait [#allocation3], 2048  }
   0xd   :  { %457 = vsyncadd [#allocation3], 4294965248  ;;  %v24_v0 = vld [vmem:[#allocation2 + $0x10] sm:$0xff]  ;;  %v22_v1 = vld [vmem:[#allocation2] sm:$0xff]  ;;  %s461_s13 = smov 127   ;;  %s462_s0 = smov 126  }
   0xe   :  { %v25_v2 = vld [vmem:[#allocation2 + $0x18] sm:$0xff]  ;;  %v56_v3 = vmul.f32 0.36166447, %v24_v0  ;;  %v54_v4 = vmul.f32 0.36166447, %v22_v1  ;;  %v23_v5 = vld [vmem:[#allocation2 + $0x8] sm:$0xff] }
   0xf   :  { %v57_v6 = vmul.f32 0.36166447, %v25_v2  ;;  %v55_v7 = vmul.f32 0.36166447, %v23_v5  ;;  %v27_v8 = vld [vmem:[#allocation2 + $0x28] sm:$0xff]  ;;  %v26_v9 = vld [vmem:[#allocation2 + $0x20] sm:$0xff] }
  0x10   :  { %90 = vrot.lane.b32.xlu1 %v56_v3, %s461_s13  ;;  %86 = vrot.lane.b32.xlu0 %v54_v4, %s461_s13  ;;  %v59_v10 = vmul.f32 0.36166447, %v27_v8  ;;  %v58_v11 = vmul.f32 0.36166447, %v26_v9  ;;  %v29_v12 = vld [vmem:[#allocation2 + $0x38] sm:$0xff]  ;;  %v28_v13 = vld [vmem:[#allocation2 + $0x30] sm:$0xff] }
  0x11   :  { %v61_v14 = vmul.f32 0.36166447, %v29_v12  ;;  %v60_v15 = vmul.f32 0.36166447, %v28_v13  ;;  %v31_v16 = vld [vmem:[#allocation2 + $0x48] sm:$0xff]  ;;  %v30_v17 = vld [vmem:[#allocation2 + $0x40] sm:$0xff] }
  0x12   :  { %v63_v18 = vmul.f32 0.36166447, %v31_v16  ;;  %v62_v19 = vmul.f32 0.36166447, %v30_v17  ;;  %v33_v20 = vld [vmem:[#allocation2 + $0x58] sm:$0xff]  ;;  %v32_v21 = vld [vmem:[#allocation2 + $0x50] sm:$0xff] }
  0x13   :  { %v65_v22 = vmul.f32 0.36166447, %v33_v20  ;;  %v64_v23 = vmul.f32 0.36166447, %v32_v21  ;;  %v35_v24 = vld [vmem:[#allocation2 + $0x68] sm:$0xff]  ;;  %v34_v25 = vld [vmem:[#allocation2 + $0x60] sm:$0xff] }
  0x14   :  { %92 = vrot.lane.b32.xlu1 %v57_v6, %s461_s13  ;;  %88 = vrot.lane.b32.xlu0 %v55_v7, %s461_s13  ;;  %v67_v26 = vmul.f32 0.36166447, %v35_v24  ;;  %v66_v27 = vmul.f32 0.36166447, %v34_v25  ;;  %v37_v28 = vld [vmem:[#allocation2 + $0x78] sm:$0xff]  ;;  %v36_v29 = vld [vmem:[#allocation2 + $0x70] sm:$0xff] }
  0x15   :  { %v69_v30 = vmul.f32 0.36166447, %v37_v28  ;;  %v68_v31 = vmul.f32 0.36166447, %v36_v29  ;;  %v38_v32 = vmul.f32 0.31916776, %v22_v1 }
  0x16   :  { %v39_v33 = vmul.f32 0.31916776, %v23_v5  ;;  %v40_v34 = vmul.f32 0.31916776, %v24_v0  ;;  %v41_v35 = vmul.f32 0.31916776, %v25_v2 }
  0x17   :  { %v43_v36 = vmul.f32 0.31916776, %v27_v8  ;;  %v42_v37 = vmul.f32 0.31916776, %v26_v9  ;;  %v45_v38 = vmul.f32 0.31916776, %v29_v12 }
  0x18   :  { %96 = vrot.lane.b32.xlu1 %v59_v10, %s461_s13  ;;  %94 = vrot.lane.b32.xlu0 %v58_v11, %s461_s13  ;;  %v44_v39 = vmul.f32 0.31916776, %v28_v13  ;;  %v47_v40 = vmul.f32 0.31916776, %v31_v16  ;;  %v492_v41 = vmul.f32 0.31916776, %v30_v17 }
  0x19   :  { %v495_v42 = vmul.f32 0.31916776, %v33_v20  ;;  %v497_v43 = vmul.f32 0.31916776, %v32_v21  ;;  %v501_v44 = vmul.f32 0.31916776, %v35_v24 }
  0x1a   :  { %v503_v45 = vmul.f32 0.31916776, %v34_v25  ;;  %v507_v46 = vmul.f32 0.31916776, %v37_v28  ;;  %v509_v47 = vmul.f32 0.31916776, %v36_v29 }
  0x1b   :  { %vm410_vm0 = vcmask 111616   ;;  %vm278_vm1 = vcmask 1046528   ;;  %vm351_vm2 = vcmask 1045504   ;;  %vm408_vm3 = vcmask 113664  }
  0x1c   :  { %100 = vrot.lane.b32.xlu1 %v61_v14, %s461_s13  ;;  %98 = vrot.lane.b32.xlu0 %v60_v15, %s461_s13 }
  0x20   :  { %104 = vrot.lane.b32.xlu1 %v63_v18, %s461_s13  ;;  %102 = vrot.lane.b32.xlu0 %v62_v19, %s461_s13 }
  0x24   :  { %108 = vrot.lane.b32.xlu1 %v65_v22, %s461_s13  ;;  %106 = vrot.lane.b32.xlu0 %v64_v23, %s461_s13 }
  0x28   :  { %112 = vrot.lane.b32.xlu1 %v67_v26, %s461_s13  ;;  %110 = vrot.lane.b32.xlu0 %v66_v27, %s461_s13 }
  0x2c   :  { %116 = vrot.lane.b32.xlu1 %v69_v30, %s461_s13  ;;  %114 = vrot.lane.b32.xlu0 %v68_v31, %s461_s13 }
  0x30   :  { %168 = vrot.lane.b32.xlu1 %v39_v33, %s462_s0  ;;  %166 = vrot.lane.b32.xlu0 %v38_v32, %s462_s0 }
  0x34   :  { %172 = vrot.lane.b32.xlu1 %v41_v35, %s462_s0  ;;  %170 = vrot.lane.b32.xlu0 %v40_v34, %s462_s0 }
  0x38   :  { %176 = vrot.lane.b32.xlu1 %v43_v36, %s462_s0  ;;  %174 = vrot.lane.b32.xlu0 %v42_v37, %s462_s0 }
  0x3c   :  { %180 = vrot.lane.b32.xlu1 %v45_v38, %s462_s0  ;;  %178 = vrot.lane.b32.xlu0 %v44_v39, %s462_s0 }
  0x40   :  { %184 = vrot.lane.b32.xlu1 %v47_v40, %s462_s0  ;;  %182 = vrot.lane.b32.xlu0 %v492_v41, %s462_s0 }
  0x44   :  { %188 = vrot.lane.b32.xlu1 %v495_v42, %s462_s0  ;;  %186 = vrot.lane.b32.xlu0 %v497_v43, %s462_s0 }
  0x48   :  { %192 = vrot.lane.b32.xlu1 %v501_v44, %s462_s0  ;;  %190 = vrot.lane.b32.xlu0 %v503_v45, %s462_s0 }
  0x4c   :  { %196 = vrot.lane.b32.xlu1 %v507_v46, %s462_s0  ;;  %194 = vrot.lane.b32.xlu0 %v509_v47, %s462_s0 }
  0x82   :  { %v91_v48 = vpop.permute.xlu1 %90  ;;  %v87_v49 = vpop.permute.xlu0 %86 }
  0x83   :  { %v134_v0 = vadd.f32 %v87_v49, %v38_v32  ;;  %v136_v10 = vadd.f32 %v91_v48, %v40_v34 }
  0x86   :  { %v93_v50 = vpop.permute.xlu1 %92  ;;  %v89_v51 = vpop.permute.xlu0 %88 }
  0x87   :  { %v135_v1 = vadd.f32 %v89_v51, %v39_v33  ;;  %v137_v6 = vadd.f32 %v93_v50, %v41_v35 }
  0x8a   :  { %v97_v52 = vpop.permute.xlu1 %96  ;;  %v95_v53 = vpop.permute.xlu0 %94 }
  0x8b   :  { %v139_v11 = vadd.f32 %v97_v52, %v43_v36  ;;  %v138_v12 = vadd.f32 %v95_v53, %v42_v37 }
  0x8e   :  { %v101_v54 = vpop.permute.xlu1 %100  ;;  %v99_v55 = vpop.permute.xlu0 %98 }
  0x8f   :  { %v141_v20 = vadd.f32 %v101_v54, %v45_v38  ;;  %v140_v21 = vadd.f32 %v99_v55, %v44_v39 }
  0x92   :  { %v105_v56 = vpop.permute.xlu1 %104  ;;  %v103_v57 = vpop.permute.xlu0 %102 }
  0x93   :  { %v143_v24 = vadd.f32 %v105_v56, %v47_v40  ;;  %v142_v40 = vadd.f32 %v103_v57, %v492_v41 }
  0x96   :  { %v109_v58 = vpop.permute.xlu1 %108  ;;  %v513_v59 = vpop.permute.xlu0 %106 }
  0x97   :  { %v145_v50 = vadd.f32 %v109_v58, %v495_v42 }
  0x9a   :  { %v515_v60 = vpop.permute.xlu1 %112  ;;  %v517_v61 = vpop.permute.xlu0 %110 }
  0x9e   :  { %v519_v62 = vpop.permute.xlu1 %116  ;;  %v521_v63 = vpop.permute.xlu0 %114 }
  0xa2   :  { %v169_v2 = vpop.permute.xlu1 %168  ;;  %v167_v3 = vpop.permute.xlu0 %166 }
  0xa3   :  { %v215_v4 = vadd.f32 %v169_v2, %v135_v1  ;;  %v214_v5 = vadd.f32 %v167_v3, %v134_v0 }
  0xa5   :  { %v231_v7 = vmul.f32 0.31916776, %v215_v4  ;;  %v247_v8 = vmul.f32 0.36166447, %v215_v4  ;;  %v230_v9 = vmul.f32 0.31916776, %v214_v5 }
  0xa6   :  { %v246_v13 = vmul.f32 0.36166447, %v214_v5  ;;  %v173_v14 = vpop.permute.xlu1 %172  ;;  %v171_v15 = vpop.permute.xlu0 %170 }
  0xa7   :  { %v280_v16 = vrot.slane %v247_v8, 1  ;;  %v353_v17 = vrot.slane %v231_v7, 2  ;;  %v352_v18 = vrot.slane %v230_v9, 2  ;;  %v217_v19 = vadd.f32 %v173_v14, %v137_v6 }
  0xa8   :  { %v279_v22 = vrot.slane %v246_v13, 1  ;;  %v216_v23 = vadd.f32 %v171_v15, %v136_v10  ;;  %v144_v6 = vadd.f32 %v513_v59, %v497_v43 }
  0xa9   :  { %v320_v25 = vadd.f32 %v280_v16, %v231_v7  ;;  %v233_v26 = vmul.f32 0.31916776, %v217_v19  ;;  %v249_v27 = vmul.f32 0.36166447, %v217_v19  ;;  %v354_v29 = vsel %vm351_vm2, %v352_v18, %v353_v17 }
  0xaa   :  { %v281_v28 = vsel %vm278_vm1, %v279_v22, %v280_v16  ;;  %v232_v30 = vmul.f32 0.31916776, %v216_v23  ;;  %v248_v31 = vmul.f32 0.36166447, %v216_v23  ;;  %v177_v32 = vpop.permute.xlu1 %176  ;;  %v175_v33 = vpop.permute.xlu0 %174 }
  0xab   :  { %v393_v34 = vadd.f32 %v353_v17, %v320_v25  ;;  %v319_v35 = vadd.f32 %v281_v28, %v230_v9  ;;  %v283_v36 = vrot.slane %v249_v27, 1  ;;  %v356_v37 = vrot.slane %v233_v26, 2 }
  0xac   :  { %v282_v38 = vrot.slane %v248_v31, 1  ;;  %v355_v39 = vrot.slane %v232_v30, 2  ;;  %v219_v48 = vadd.f32 %v177_v32, %v139_v11  ;;  %v218_v49 = vadd.f32 %v175_v33, %v138_v12 }
  0xad   :  { %411 = vst.msk [vmem:[%s616_s1 + $0x8] sm:$0x3f] %vm410_vm0, %v393_v34  ;;  %v392_v51 = vadd.f32 %v354_v29, %v319_v35  ;;  %v322_v52 = vadd.f32 %v283_v36, %v233_v26  ;;  %v147_v27 = vadd.f32 %v515_v60, %v501_v44  ;;  %v146_v32 = vadd.f32 %v517_v61, %v503_v45 }
  0xae   :  { %v284_v53 = vsel %vm278_vm1, %v282_v38, %v283_v36  ;;  %v357_v54 = vsel %vm351_vm2, %v355_v39, %v356_v37  ;;  %v235_v55 = vmul.f32 0.31916776, %v219_v48  ;;  %v251_v56 = vmul.f32 0.36166447, %v219_v48  ;;  %v181_v0 = vpop.permute.xlu1 %180  ;;  %v179_v1 = vpop.permute.xlu0 %178 }
  0xaf   :  { %409 = vst.msk [vmem:[%s616_s1] sm:$0xff] %vm408_vm3, %v392_v51  ;;  %v395_v41 = vadd.f32 %v356_v37, %v322_v52  ;;  %v321_v42 = vadd.f32 %v284_v53, %v232_v30  ;;  %v234_v57 = vmul.f32 0.31916776, %v218_v49  ;;  %v250_v58 = vmul.f32 0.36166447, %v218_v49 }
  0xb0   :  { %v286_v2 = vrot.slane %v251_v56, 1  ;;  %v359_v3 = vrot.slane %v235_v55, 2  ;;  %v221_v4 = vadd.f32 %v181_v0, %v141_v20  ;;  %v220_v5 = vadd.f32 %v179_v1, %v140_v21 }
  0xb1   :  { %413 = vst.msk [vmem:[%s616_s1 + $0x18] sm:$0x3f] %vm410_vm0, %v395_v41  ;;  %v394_v7 = vadd.f32 %v357_v54, %v321_v42  ;;  %v285_v8 = vrot.slane %v250_v58, 1  ;;  %v358_v9 = vrot.slane %v234_v57, 2  ;;  %v149_v45 = vadd.f32 %v519_v62, %v507_v46 }
  0xb2   :  { %v324_v10 = vadd.f32 %v286_v2, %v235_v55  ;;  %v237_v11 = vmul.f32 0.31916776, %v221_v4  ;;  %v253_v12 = vmul.f32 0.36166447, %v221_v4  ;;  %v236_v13 = vmul.f32 0.31916776, %v220_v5  ;;  %v185_v14 = vpop.permute.xlu1 %184  ;;  %v183_v15 = vpop.permute.xlu0 %182 }
  0xb3   :  { %412 = vst.msk [vmem:[%s616_s1 + $0x10] sm:$0xff] %vm408_vm3, %v394_v7  ;;  %v287_v43 = vsel %vm278_vm1, %v285_v8, %v286_v2  ;;  %v360_v59 = vsel %vm351_vm2, %v358_v9, %v359_v3  ;;  %v252_v16 = vmul.f32 0.36166447, %v220_v5  ;;  %v223_v17 = vadd.f32 %v185_v14, %v143_v24 }
  0xb4   :  { %v397_v18 = vadd.f32 %v359_v3, %v324_v10  ;;  %v323_v19 = vadd.f32 %v287_v43, %v234_v57  ;;  %v289_v20 = vrot.slane %v253_v12, 1  ;;  %v362_v21 = vrot.slane %v237_v11, 2 }
  0xb5   :  { %v288_v22 = vrot.slane %v252_v16, 1  ;;  %v361_v23 = vrot.slane %v236_v13, 2  ;;  %v239_v25 = vmul.f32 0.31916776, %v223_v17  ;;  %v255_v26 = vmul.f32 0.36166447, %v223_v17 }
  0xb6   :  { %415 = vst.msk [vmem:[%s616_s1 + $0x28] sm:$0x3f] %vm410_vm0, %v397_v18  ;;  %v396_v28 = vadd.f32 %v360_v59, %v323_v19  ;;  %v326_v29 = vadd.f32 %v289_v20, %v237_v11  ;;  %v222_v30 = vadd.f32 %v183_v15, %v142_v40  ;;  %v189_v24 = vpop.permute.xlu1 %188  ;;  %v187_v31 = vpop.permute.xlu0 %186  ;;  %v148_v7 = vadd.f32 %v521_v63, %v509_v47 }
  0xb7   :  { %v290_v33 = vsel %vm278_vm1, %v288_v22, %v289_v20  ;;  %v292_v34 = vrot.slane %v255_v26, 1  ;;  %v365_v35 = vrot.slane %v239_v25, 2  ;;  %v363_v38 = vsel %vm351_vm2, %v361_v23, %v362_v21 }
  0xb8   :  { %414 = vst.msk [vmem:[%s616_s1 + $0x20] sm:$0xff] %vm408_vm3, %v396_v28  ;;  %v399_v44 = vadd.f32 %v362_v21, %v326_v29  ;;  %v325_v60 = vadd.f32 %v290_v33, %v236_v13  ;;  %v238_v36 = vmul.f32 0.31916776, %v222_v30  ;;  %v254_v37 = vmul.f32 0.36166447, %v222_v30 }
  0xb9   :  { %v328_v39 = vadd.f32 %v292_v34, %v239_v25  ;;  %v225_v48 = vadd.f32 %v189_v24, %v145_v50  ;;  %v224_v49 = vadd.f32 %v187_v31, %v144_v6 }
  0xba   :  { %417 = vst.msk [vmem:[%s616_s1 + $0x38] sm:$0x3f] %vm410_vm0, %v399_v44  ;;  %v398_v61 = vadd.f32 %v363_v38, %v325_v60  ;;  %v291_v40 = vrot.slane %v254_v37, 1  ;;  %v364_v51 = vrot.slane %v238_v36, 2  ;;  %v193_v52 = vpop.permute.xlu1 %192  ;;  %v191_v53 = vpop.permute.xlu0 %190 }
  0xbb   :  { %v401_v54 = vadd.f32 %v365_v35, %v328_v39  ;;  %v241_v55 = vmul.f32 0.31916776, %v225_v48  ;;  %v257_v56 = vmul.f32 0.36166447, %v225_v48  ;;  %v240_v0 = vmul.f32 0.31916776, %v224_v49 }
  0xbc   :  { %416 = vst.msk [vmem:[%s616_s1 + $0x30] sm:$0xff] %vm408_vm3, %v398_v61  ;;  %v293_v46 = vsel %vm278_vm1, %v291_v40, %v292_v34  ;;  %v366_v62 = vsel %vm351_vm2, %v364_v51, %v365_v35  ;;  %v256_v50 = vmul.f32 0.36166447, %v224_v49  ;;  %v227_v1 = vadd.f32 %v193_v52, %v147_v27 }
  0xbd   :  { %419 = vst.msk [vmem:[%s616_s1 + $0x48] sm:$0x3f] %vm410_vm0, %v401_v54  ;;  %v327_v41 = vadd.f32 %v293_v46, %v238_v36  ;;  %v295_v42 = vrot.slane %v257_v56, 1  ;;  %v368_v57 = vrot.slane %v241_v55, 2  ;;  %v367_v58 = vrot.slane %v240_v0, 2 }
  0xbe   :  { %v294_v2 = vrot.slane %v256_v50, 1  ;;  %v243_v3 = vmul.f32 0.31916776, %v227_v1  ;;  %v259_v4 = vmul.f32 0.36166447, %v227_v1  ;;  %v226_v5 = vadd.f32 %v191_v53, %v146_v32  ;;  %v197_v6 = vpop.permute.xlu1 %196  ;;  %v195_v11 = vpop.permute.xlu0 %194 }
  0xbf   :  { %v400_v8 = vadd.f32 %v366_v62, %v327_v41  ;;  %v330_v9 = vadd.f32 %v295_v42, %v241_v55  ;;  %v229_v10 = vadd.f32 %v197_v6, %v149_v45  ;;  %v369_v13 = vsel %vm351_vm2, %v367_v58, %v368_v57 }
  0xc0   :  { %v296_v12 = vsel %vm278_vm1, %v294_v2, %v295_v42  ;;  %v298_v14 = vrot.slane %v259_v4, 1  ;;  %v242_v15 = vmul.f32 0.31916776, %v226_v5  ;;  %v371_v16 = vrot.slane %v243_v3, 2 }
  0xc1   :  { %418 = vst.msk [vmem:[%s616_s1 + $0x40] sm:$0xff] %vm408_vm3, %v400_v8  ;;  %v403_v43 = vadd.f32 %v368_v57, %v330_v9  ;;  %v329_v59 = vadd.f32 %v296_v12, %v240_v0  ;;  %v258_v17 = vmul.f32 0.36166447, %v226_v5  ;;  %v245_v63 = vmul.f32 0.31916776, %v229_v10 }
  0xc2   :  { %v332_v47 = vadd.f32 %v298_v14, %v243_v3  ;;  %v261_v18 = vmul.f32 0.36166447, %v229_v10  ;;  %v228_v19 = vadd.f32 %v195_v11, %v148_v7  ;;  %v370_v22 = vrot.slane %v242_v15, 2 }
  0xc3   :  { %421 = vst.msk [vmem:[%s616_s1 + $0x58] sm:$0x3f] %vm410_vm0, %v403_v43  ;;  %v402_v20 = vadd.f32 %v369_v13, %v329_v59  ;;  %v297_v21 = vrot.slane %v258_v17, 1  ;;  %v374_v24 = vrot.slane %v245_v63, 2 }
  0xc4   :  { %v405_v23 = vadd.f32 %v371_v16, %v332_v47  ;;  %v301_v25 = vrot.slane %v261_v18, 1  ;;  %v244_v26 = vmul.f32 0.31916776, %v228_v19  ;;  %v260_v28 = vmul.f32 0.36166447, %v228_v19 }
  0xc5   :  { %420 = vst.msk [vmem:[%s616_s1 + $0x50] sm:$0xff] %vm408_vm3, %v402_v20  ;;  %v299_v27 = vsel %vm278_vm1, %v297_v21, %v298_v14  ;;  %v372_v31 = vsel %vm351_vm2, %v370_v22, %v371_v16 }
  0xc6   :  { %423 = vst.msk [vmem:[%s616_s1 + $0x68] sm:$0x3f] %vm410_vm0, %v405_v23  ;;  %v331_v29 = vadd.f32 %v299_v27, %v242_v15  ;;  %v334_v30 = vadd.f32 %v301_v25, %v245_v63  ;;  %v300_v32 = vrot.slane %v260_v28, 1  ;;  %v373_v33 = vrot.slane %v244_v26, 2 }
  0xc8   :  { %v404_v34 = vadd.f32 %v372_v31, %v331_v29  ;;  %v407_v35 = vadd.f32 %v374_v24, %v334_v30  ;;  %v302_v44 = vsel %vm278_vm1, %v300_v32, %v301_v25  ;;  %v375_v36 = vsel %vm351_vm2, %v373_v33, %v374_v24 }
  0xc9   :  { %v333_v60 = vadd.f32 %v302_v44, %v244_v26 }
  0xca   :  { %422 = vst.msk [vmem:[%s616_s1 + $0x60] sm:$0xff] %vm408_vm3, %v404_v34 }
  0xcb   :  { %425 = vst.msk [vmem:[%s616_s1 + $0x78] sm:$0x3f] %vm410_vm0, %v407_v35  ;;  %v406_v37 = vadd.f32 %v375_v36, %v333_v60 }
  0xcd   :  { %424 = vst.msk [vmem:[%s616_s1 + $0x70] sm:$0xff] %vm408_vm3, %v406_v37 }
  0xce   :  { %430 = vsyncpa [#allocation3], 1 }

</bundles_post_ra>
